<compile_context>
chip_gen: v6e
topology: v6e:2x2x1
jax: 0.10.0
libtpu: 0.0.40
codegen_flags: <defaults>
</compile_context>

<pallas_src>
import jax
import jax.numpy as jnp
from jax.experimental import pallas as pl
from jax.experimental.pallas import tpu as pltpu

HIDDEN = 64
LANE = 128


def _round_up(x, m):
    return ((x + m - 1) // m) * m


def _choose_tile(b_pad, tile_max):
    """Pick the lane-tile (multiple of 128, divides b_pad, >=2 grid steps
    when b_pad >= 256 so v7x's two TensorCores both get work)."""
    if b_pad <= LANE:
        return b_pad
    tile = min(tile_max, b_pad // 2)
    tile = max(LANE, (tile // LANE) * LANE)
    while b_pad % tile != 0:
        tile -= LANE
    return tile


def mlp_kernel(x_ref, w1_ref, b1_ref, w2_ref, b2_ref, w3_ref, b3_ref, o_ref):
    # x_ref: (in_size, TM) — batch on the lane axis.
    # Weights are PyTorch-native (out_features, in_features); biases (out, 1).
    # Layer 1: h1^T = W1 @ x^T, bias broadcast over lanes, ReLU.
    h1 = jnp.dot(w1_ref[...], x_ref[...], preferred_element_type=jnp.float32)
    h1 = jnp.maximum(h1 + b1_ref[...], 0.0)                      # (64, TM)

    # Layer 2.
    h2 = jnp.dot(w2_ref[...], h1.astype(w2_ref.dtype),
                 preferred_element_type=jnp.float32)
    h2 = jnp.maximum(h2 + b2_ref[...], 0.0)                      # (64, TM)

    # Layer 3 (output): (out_size, TM) — lane-dense, no padding columns.
    out = jnp.dot(w3_ref[...], h2.astype(w3_ref.dtype),
                  preferred_element_type=jnp.float32)
    o_ref[...] = (out + b3_ref[...]).astype(o_ref.dtype)


def my_network_forward(x, params, *, tile_max=2048, compute_dtype=jnp.float32):
    """Forward pass of MyNetwork as one batch-tiled Pallas kernel.

    x: [batch, input_size]
    params: dict with PyTorch-native layouts:
        w1 [64, in], b1 [64, 1], w2 [64, 64], b2 [64, 1],
        w3 [out, 64], b3 [out, 1]
    Returns [batch, output_size] float32.
    """
    batch, in_size = x.shape
    out_size = params["w3"].shape[0]

    b_pad = _round_up(max(batch, 1), LANE)
    tile_m = _choose_tile(b_pad, tile_max)
    grid = (b_pad // tile_m,)

    # x^T with batch on lanes; single cast+transpose+pad (tiny: in_size cols).
    xt = x.T.astype(compute_dtype)
    if b_pad != batch:
        xt = jnp.pad(xt, ((0, 0), (0, b_pad - batch)))

    w1, b1 = params["w1"], params["b1"]
    w2, b2 = params["w2"], params["b2"]
    w3, b3 = params["w3"], params["b3"]

    flops = 2 * b_pad * (in_size * HIDDEN + HIDDEN * HIDDEN + HIDDEN * out_size)
    bytes_accessed = (
        xt.size * xt.dtype.itemsize
        + sum(p.size * p.dtype.itemsize for p in (w1, w2, w3, b1, b2, b3))
        + out_size * b_pad * 4
    )

    out_t = pl.pallas_call(
        mlp_kernel,
        out_shape=jax.ShapeDtypeStruct((out_size, b_pad), jnp.float32),
        grid=grid,
        in_specs=[
            # x^T: streamed per lane (batch) tile.
            pl.BlockSpec((in_size, tile_m), lambda i: (0, i)),
            # Weights / biases: constant index maps -> VMEM-resident.
            pl.BlockSpec((HIDDEN, in_size), lambda i: (0, 0)),
            pl.BlockSpec((HIDDEN, 1), lambda i: (0, 0)),
            pl.BlockSpec((HIDDEN, HIDDEN), lambda i: (0, 0)),
            pl.BlockSpec((HIDDEN, 1), lambda i: (0, 0)),
            pl.BlockSpec((out_size, HIDDEN), lambda i: (0, 0)),
            pl.BlockSpec((out_size, 1), lambda i: (0, 0)),
        ],
        out_specs=pl.BlockSpec((out_size, tile_m), lambda i: (0, i)),
        compiler_params=pltpu.CompilerParams(
            dimension_semantics=("parallel",),   # megacore split on v7x
            vmem_limit_bytes=32 * 1024 * 1024,
        ),
        cost_estimate=pl.CostEstimate(
            flops=flops, transcendentals=0, bytes_accessed=bytes_accessed),
    )(xt, w1, b1, w2, b2, w3, b3)

    # (out_size, b_pad) -> (batch, out_size); tiny transpose (out_size rows).
    return out_t[:, :batch].T


def init_params(key, input_size, output_size, hidden=HIDDEN):
    """Deterministic init mimicking PyTorch nn.Linear default
    (U[-1/sqrt(fan_in), 1/sqrt(fan_in)]). Kernel-ready layout: weights
    [out_features, in_features] (PyTorch-native), biases [out_features, 1].
    Prepared ONCE here so the forward does no per-call conversion."""
    ks = jax.random.split(key, 6)

    def uniform(k, shape, fan_in):
        bound = 1.0 / jnp.sqrt(jnp.float32(fan_in))
        return jax.random.uniform(k, shape, jnp.float32, -bound, bound)

    return {
        "w1": uniform(ks[0], (hidden, input_size), input_size),
        "b1": uniform(ks[1], (hidden, 1), input_size),
        "w2": uniform(ks[2], (hidden, hidden), hidden),
        "b2": uniform(ks[3], (hidden, 1), hidden),
        "w3": uniform(ks[4], (output_size, hidden), hidden),
        "b3": uniform(ks[5], (output_size, 1), hidden),
    }


def reference_forward(x, p):
    """Pure-JAX f32 reference matching the PyTorch module."""
    h1 = jnp.maximum(x @ p["w1"].T + p["b1"][:, 0], 0.0)
    h2 = jnp.maximum(h1 @ p["w2"].T + p["b2"][:, 0], 0.0)
    return h2 @ p["w3"].T + p["b3"][:, 0]


if __name__ == "__main__":
    key = jax.random.PRNGKey(0)
    k_x, k_p = jax.random.split(key)

    # DQN-style shapes: state dim 8, 4 actions, small batch.
    batch, input_size, output_size = 2, 8, 4
    x = jax.random.normal(k_x, (batch, input_size), jnp.float32)
    params = init_params(k_p, input_size, output_size)

    out = my_network_forward(x, params)
    out = jax.block_until_ready(out)

    ref = reference_forward(x, params)
    assert out.shape == (batch, output_size)
    assert jnp.allclose(out, ref, atol=1e-4, rtol=1e-4), \
        "mismatch vs. pure-JAX reference"

    print("KERNEL_OK")
</pallas_src>

<mosaic_0001>
module attributes {stable_mosaic.version = 11 : i64} {
  func.func @mlp_kernel(%arg0: i32, %arg1: memref<8x128xf32, #tpu.memory_space<vmem>>, %arg2: memref<64x8xf32, #tpu.memory_space<vmem>>, %arg3: memref<64x1xf32, #tpu.memory_space<vmem>>, %arg4: memref<64x64xf32, #tpu.memory_space<vmem>>, %arg5: memref<64x1xf32, #tpu.memory_space<vmem>>, %arg6: memref<4x64xf32, #tpu.memory_space<vmem>>, %arg7: memref<4x1xf32, #tpu.memory_space<vmem>>, %arg8: memref<4x128xf32, #tpu.memory_space<vmem>>) attributes {dimension_semantics = [#tpu.dimension_semantics<parallel>], iteration_bounds = array<i64: 1>, scalar_prefetch = 0 : i64, scratch_operands = 0 : i64, tpu.core_type = #tpu.core_type<tc>, window_params = [{transform_indices = @transform_0, window_bounds = array<i64: 8, 128>}, {pipeline_mode = #tpu.pipeline_mode<synchronous>, transform_indices = @transform_1, window_bounds = array<i64: 64, 8>}, {pipeline_mode = #tpu.pipeline_mode<synchronous>, transform_indices = @transform_2, window_bounds = array<i64: 64, 1>}, {pipeline_mode = #tpu.pipeline_mode<synchronous>, transform_indices = @transform_3, window_bounds = array<i64: 64, 64>}, {pipeline_mode = #tpu.pipeline_mode<synchronous>, transform_indices = @transform_4, window_bounds = array<i64: 64, 1>}, {pipeline_mode = #tpu.pipeline_mode<synchronous>, transform_indices = @transform_5, window_bounds = array<i64: 4, 64>}, {pipeline_mode = #tpu.pipeline_mode<synchronous>, transform_indices = @transform_6, window_bounds = array<i64: 4, 1>}, {transform_indices = @transform_7, window_bounds = array<i64: 4, 128>}]} {
    %c0 = arith.constant 0 : index
    %c0_0 = arith.constant 0 : index
    %0 = vector.load %arg2[%c0, %c0_0] : memref<64x8xf32, #tpu.memory_space<vmem>>, vector<64x8xf32>
    %c0_1 = arith.constant 0 : index
    %c0_2 = arith.constant 0 : index
    %1 = vector.load %arg1[%c0_1, %c0_2] : memref<8x128xf32, #tpu.memory_space<vmem>>, vector<8x128xf32>
    %cst = arith.constant dense<0.000000e+00> : vector<64x128xf32>
    %2 = tpu.matmul %0, %1, %cst {dimension_numbers = #tpu.dot_dimension_numbers<[1], [0], [0], [1], [0, 0, 1, 1], [], []>} : vector<64x8xf32>, vector<8x128xf32>, vector<64x128xf32> -> vector<64x128xf32>
    %c0_3 = arith.constant 0 : index
    %c0_4 = arith.constant 0 : index
    %3 = vector.load %arg3[%c0_3, %c0_4] : memref<64x1xf32, #tpu.memory_space<vmem>>, vector<64x1xf32>
    %4 = vector.broadcast %3 : vector<64x1xf32> to vector<64x128xf32>
    %5 = arith.addf %2, %4 : vector<64x128xf32>
    %cst_5 = arith.constant 0.000000e+00 : f32
    %6 = vector.broadcast %cst_5 : f32 to vector<64x128xf32>
    %7 = arith.maximumf %5, %6 : vector<64x128xf32>
    %c0_6 = arith.constant 0 : index
    %c0_7 = arith.constant 0 : index
    %8 = vector.load %arg4[%c0_6, %c0_7] : memref<64x64xf32, #tpu.memory_space<vmem>>, vector<64x64xf32>
    %cst_8 = arith.constant dense<0.000000e+00> : vector<64x128xf32>
    %9 = tpu.matmul %8, %7, %cst_8 {dimension_numbers = #tpu.dot_dimension_numbers<[1], [0], [0], [1], [0, 0, 1, 1], [], []>} : vector<64x64xf32>, vector<64x128xf32>, vector<64x128xf32> -> vector<64x128xf32>
    %c0_9 = arith.constant 0 : index
    %c0_10 = arith.constant 0 : index
    %10 = vector.load %arg5[%c0_9, %c0_10] : memref<64x1xf32, #tpu.memory_space<vmem>>, vector<64x1xf32>
    %11 = vector.broadcast %10 : vector<64x1xf32> to vector<64x128xf32>
    %12 = arith.addf %9, %11 : vector<64x128xf32>
    %cst_11 = arith.constant 0.000000e+00 : f32
    %13 = vector.broadcast %cst_11 : f32 to vector<64x128xf32>
    %14 = arith.maximumf %12, %13 : vector<64x128xf32>
    %c0_12 = arith.constant 0 : index
    %c0_13 = arith.constant 0 : index
    %15 = vector.load %arg6[%c0_12, %c0_13] : memref<4x64xf32, #tpu.memory_space<vmem>>, vector<4x64xf32>
    %cst_14 = arith.constant dense<0.000000e+00> : vector<4x128xf32>
    %16 = tpu.matmul %15, %14, %cst_14 {dimension_numbers = #tpu.dot_dimension_numbers<[1], [0], [0], [1], [0, 0, 1, 1], [], []>} : vector<4x64xf32>, vector<64x128xf32>, vector<4x128xf32> -> vector<4x128xf32>
    %c0_15 = arith.constant 0 : index
    %c0_16 = arith.constant 0 : index
    %17 = vector.load %arg7[%c0_15, %c0_16] : memref<4x1xf32, #tpu.memory_space<vmem>>, vector<4x1xf32>
    %18 = vector.broadcast %17 : vector<4x1xf32> to vector<4x128xf32>
    %19 = arith.addf %16, %18 : vector<4x128xf32>
    %c0_17 = arith.constant 0 : index
    %c0_18 = arith.constant 0 : index
    %20 = vector.load %arg8[%c0_17, %c0_18] : memref<4x128xf32, #tpu.memory_space<vmem>>, vector<4x128xf32>
    tpu.vector_store %arg8[%c0_17, %c0_18], %19 {strides = array<i32>} : memref<4x128xf32, #tpu.memory_space<vmem>>, vector<4x128xf32>,
    return
  }
  func.func @transform_0(%arg0: i32) -> (i32, i32) {
    %c0_i32 = arith.constant 0 : i32
    %c0_i32_0 = arith.constant 0 : i32
    return %c0_i32, %arg0 : i32, i32
  }
  func.func @transform_1(%arg0: i32) -> (i32, i32) {
    %c0_i32 = arith.constant 0 : i32
    %c0_i32_0 = arith.constant 0 : i32
    %c0_i32_1 = arith.constant 0 : i32
    return %c0_i32, %c0_i32_0 : i32, i32
  }
  func.func @transform_2(%arg0: i32) -> (i32, i32) {
    %c0_i32 = arith.constant 0 : i32
    %c0_i32_0 = arith.constant 0 : i32
    %c0_i32_1 = arith.constant 0 : i32
    return %c0_i32, %c0_i32_0 : i32, i32
  }
  func.func @transform_3(%arg0: i32) -> (i32, i32) {
    %c0_i32 = arith.constant 0 : i32
    %c0_i32_0 = arith.constant 0 : i32
    %c0_i32_1 = arith.constant 0 : i32
    return %c0_i32, %c0_i32_0 : i32, i32
  }
  func.func @transform_4(%arg0: i32) -> (i32, i32) {
    %c0_i32 = arith.constant 0 : i32
    %c0_i32_0 = arith.constant 0 : i32
    %c0_i32_1 = arith.constant 0 : i32
    return %c0_i32, %c0_i32_0 : i32, i32
  }
  func.func @transform_5(%arg0: i32) -> (i32, i32) {
    %c0_i32 = arith.constant 0 : i32
    %c0_i32_0 = arith.constant 0 : i32
    %c0_i32_1 = arith.constant 0 : i32
    return %c0_i32, %c0_i32_0 : i32, i32
  }
  func.func @transform_6(%arg0: i32) -> (i32, i32) {
    %c0_i32 = arith.constant 0 : i32
    %c0_i32_0 = arith.constant 0 : i32
    %c0_i32_1 = arith.constant 0 : i32
    return %c0_i32, %c0_i32_0 : i32, i32
  }
  func.func @transform_7(%arg0: i32) -> (i32, i32) {
    %c0_i32 = arith.constant 0 : i32
    %c0_i32_0 = arith.constant 0 : i32
    return %c0_i32, %arg0 : i32, i32
  }
}

</mosaic_0001>

<bundles_post_ra>
// kernel: tpu_custom_call.1
= control target key start
LH: loop header
LB: loop body
LE: loop exit
PB: predicated region body
PF: predicated region fallthrough
CT: control target
= control target key end

     0   :  { %vm84_vm0 = vcmask 64512   ;;  %v651_v4 = vmov 0   ;;  %s820_s0 = inlined_call_operand.vmem [shape: f32[8,128], index: 0, kind: input, shape index: {}]   ;;  %s821_s1 = inlined_call_operand.vmem [shape: f32[64,8], index: 1, kind: input, shape index: {}]   ;;  %s822_s2 = inlined_call_operand.vmem [shape: f32[64,1], index: 2, kind: input, shape index: {}]   ;;  %s823_s3 = inlined_call_operand.vmem [shape: f32[64,64], index: 3, kind: input, shape index: {}]   ;;  %s824_s4 = inlined_call_operand.vmem [shape: f32[64,1], index: 4, kind: input, shape index: {}]   ;;  %s825_s5 = inlined_call_operand.vmem [shape: f32[4,64], index: 5, kind: input, shape index: {}]   ;;  %s826_s6 = inlined_call_operand.vmem [shape: f32[4,1], index: 6, kind: input, shape index: {}]   ;;  %s827_s7 = inlined_call_operand.hbm [shape: f32[4,128], index: 7, kind: output, shape index: {}]  }
   0x1   :  { %v35_v0 = vld [vmem:[%s820_s0] sm:$0xff]  ;;  %v28_v2 = vld [vmem:[%s821_s1 + $0x8] sm:$0xff]  ;;  %v29_v3 = vld [vmem:[%s821_s1 + $0x10] sm:$0xff]  ;;  %627 = vset.pattern.permute.xlu0 %v651_v4  ;;  %628 = vset.pattern.permute.xlu1 %v651_v4 }
   0x2   :  { %v27_v1 = vld [vmem:[%s821_s1] sm:$0xff]  ;;  %562 = vmatprep.subr.mxu0 %v35_v0  ;;  %v43_v5 = vld [vmem:[%s822_s2 + $0x38] sm:$0xff]  ;;  %v41_v6 = vld [vmem:[%s822_s2 + $0x28] sm:$0xff] }
   0x3   :  { %564 = vmatprep.mubr.msk.f32.mxu0 %vm84_vm0, %v27_v1  ;;  %563 = vmatpush3.msra.mxu0 %v35_v0  ;;  %v30_v7 = vld [vmem:[%s821_s1 + $0x18] sm:$0xff]  ;;  %v31_v8 = vld [vmem:[%s821_s1 + $0x20] sm:$0xff]  ;;  %v42_v9 = vld [vmem:[%s822_s2 + $0x30] sm:$0xff] }
   0x4   :  { %565 = vmatmul.mubr.msk.f32.vlgmr.msra.gmra.mxu0 %vm84_vm0, %v28_v2  ;;  %81 = vperm.xlu0 %627, %v43_v5   ;;  %v40_v10 = vld [vmem:[%s822_s2 + $0x20] sm:$0xff]  ;;  %v32_v11 = vld [vmem:[%s821_s1 + $0x28] sm:$0xff] }
   0x5   :  { %567 = vmatprep.mubr.msk.f32.mxu0 %vm84_vm0, %v29_v3  ;;  %71 = vperm.xlu1 %628, %v41_v6  }
   0x8   :  { %568 = vmatmul.mubr.msk.f32.gmra.mxu0 %vm84_vm0, %v30_v7  ;;  %76 = vperm.xlu0 %627, %v42_v9  }
   0x9   :  { %570 = vmatprep.mubr.msk.f32.mxu0 %vm84_vm0, %v31_v8 }
   0xa   :  { %12 = vsyncpa [#allocation3], 0  ;;  %v33_v12 = vld [vmem:[%s821_s1 + $0x30] sm:$0xff]  ;;  %v39_v13 = vld [vmem:[%s822_s2 + $0x18] sm:$0xff]  ;;  %66 = vperm.xlu1 %628, %v40_v10   ;;  %vm278_vm1 = vcmask 523264   ;;  %v652_v3 = vmov 0.0  }
   0xb   :  { %v38_v14 = vld [vmem:[%s822_s2 + $0x10] sm:$0xff]  ;;  %v34_v15 = vld [vmem:[%s821_s1 + $0x38] sm:$0xff]  ;;  %v37_v16 = vld [vmem:[%s822_s2 + $0x8] sm:$0xff]  ;;  %604 = vmatprep.subr.mxu0 %v652_v3  ;;  %vm653_vm2 = vmmov 0  }
   0xc   :  { %571 = vmatmul.mubr.msk.f32.gmra.mxu0 %vm84_vm0, %v32_v11  ;;  %61 = vperm.xlu0 %627, %v39_v13   ;;  %v36_v17 = vld [vmem:[%s822_s2] sm:$0xff]  ;;  %v237_v18 = vld [vmem:[%s824_s4 + $0x38] sm:$0xff]  ;;  %v236_v19 = vld [vmem:[%s824_s4 + $0x30] sm:$0xff]  ;;  %s654_s2 = smov [#allocation2]  }
   0xd   :  { %573 = vmatprep.mubr.msk.f32.mxu0 %vm84_vm0, %v33_v12  ;;  %v235_v20 = vld [vmem:[%s824_s4 + $0x28] sm:$0xff]  ;;  %v234_v21 = vld [vmem:[%s824_s4 + $0x20] sm:$0xff]  ;;  %v233_v22 = vld [vmem:[%s824_s4 + $0x18] sm:$0xff]  ;;  %s503_s16 = sshll.u32 %s654_s2, 4  ;;  %s504_s16 = int_to_ptr.vmem [resolvable:$true] %s503_s16 }
   0xe   :  { %56 = vperm.xlu1 %628, %v38_v14   ;;  %v232_v23 = vld [vmem:[%s824_s4 + $0x10] sm:$0xff]  ;;  %v231_v24 = vld [vmem:[%s824_s4 + $0x8] sm:$0xff]  ;;  %v230_v25 = vld [vmem:[%s824_s4] sm:$0xff]  ;;  %s629_s17 = scalar_lea.vmem %s504_s16, 64  ;;  %p634_p1 = scmp.lt.s32.totalorder %s504_s16, %s504_s16 }
   0xf   :  { %v417_v26 = vld [vmem:[%s826_s6] sm:$0xf]  ;;  %v223_v60 = vld [vmem:[%s823_s3 + $0x8] sm:$0xff]  ;;  %v224_v61 = vld [vmem:[%s823_s3 + $0x10] sm:$0xff]  ;;  %p630_p0 = scmp.ne.s32.totalorder %s504_s16, %s629_s17  ;;  %p635_p2 = scmp.lt.s32.totalorder %s629_s17, %s629_s17 }
  0x10   :  { %574 = vmatmul.mubr.msk.f32.gmra.mxu0 %vm84_vm0, %v34_v15  ;;  %51 = vperm.xlu0 %627, %v37_v16   ;;  %v222_v27 = vld [vmem:[%s823_s3] sm:$0xff]  ;;  %v225_v62 = vld [vmem:[%s823_s3 + $0x18] sm:$0xff]  ;;  %v227_v0 = vld [vmem:[%s823_s3 + $0x28] sm:$0xff] }
  0x11   :  { %592 = vmatprep.mubr.msk.f32.mxu1 %vm278_vm1, %v222_v27  ;;  %v226_v63 = vld [vmem:[%s823_s3 + $0x20] sm:$0xff]  ;;  %v228_v1 = vld [vmem:[%s823_s3 + $0x30] sm:$0xff]  ;;  %v229_v2 = vld [vmem:[%s823_s3 + $0x38] sm:$0xff]  ;;  %620 = vmatprep.mubr.msk.f32.mxu0 %vm653_vm2, %v652_v3  ;;  %p636_p3 = por %p635_p2, %p634_p1 }
  0x12   :  { %46 = vperm.xlu1 %628, %v36_v17  }
  0x13   :  { %p637_p4 = pnand %p636_p3, %p630_p0 }
  0x14   :  { %275 = vperm.xlu0 %627, %v237_v18  }
  0x16   :  { %270 = vperm.xlu1 %628, %v236_v19  }
  0x18   :  { %265 = vperm.xlu0 %627, %v235_v20  }
  0x1a   :  { %260 = vperm.xlu1 %628, %v234_v21  }
  0x1c   :  { %255 = vperm.xlu0 %627, %v233_v22  }
  0x1e   :  { %250 = vperm.xlu1 %628, %v232_v23  }
  0x20   :  { %245 = vperm.xlu0 %627, %v231_v24  }
  0x22   :  { %240 = vperm.xlu1 %628, %v230_v25  }
  0x24   :  { %420 = vperm.xlu0 %627, %v417_v26  }
  0x7f   :  { %v82_v30 = vpop.permute.xlu0 %81 }
  0x80   :  { %v72_v32 = vpop.permute.xlu1 %71 }
  0x83   :  { %v77_v35 = vpop.permute.xlu0 %76 }
  0x85   :  { %v67_v37 = vpop.permute.xlu1 %66 }
  0x87   :  { %v62_v44 = vpop.permute.xlu0 %61 }
  0x89   :  { %v57_v47 = vpop.permute.xlu1 %56 }
  0x8b   :  { %v52_v52 = vpop.permute.xlu0 %51 }
  0x8d   :  { %v47_v55 = vpop.permute.xlu1 %46 }
  0x8f   :  { %v276_v6 = vpop.permute.xlu0 %275 }
  0x91   :  { %v271_v8 = vpop.permute.xlu1 %270 }
  0x93   :  { %v266_v11 = vpop.permute.xlu0 %265 }
  0x95   :  { %v261_v13 = vpop.permute.xlu1 %260 }
  0x97   :  { %v256_v20 = vpop.permute.xlu0 %255 }
  0x99   :  { %v251_v23 = vpop.permute.xlu1 %250 }
  0xc4   :  { %v566_v28 = vpop.f32.mrf.mxu0 }
  0xc5   :  { %v181_v53 = vadd.f32 %v566_v28, %v52_v52  ;;  %v246_v28 = vpop.permute.xlu0 %245 }
  0xc6   :  { %v175_v29 = vpop.f32.mrf.mxu0 }
  0xc7   :  { %v176_v56 = vadd.f32 %v175_v29, %v47_v55  ;;  %v215_v58 = vmax.f32 %v181_v53, 0.0 }
  0xc8   :  { %v569_v31 = vpop.f32.mrf.mxu0 }
  0xc9   :  { %v191_v48 = vadd.f32 %v569_v31, %v62_v44  ;;  %v214_v59 = vmax.f32 %v176_v56, 0.0  ;;  %v241_v31 = vpop.permute.xlu1 %240 }
  0xca   :  { %v185_v33 = vpop.f32.mrf.mxu0 }
  0xcb   :  { %v186_v50 = vadd.f32 %v185_v33, %v57_v47  ;;  %v217_v54 = vmax.f32 %v191_v48, 0.0 }
  0xcc   :  { %v572_v34 = vpop.f32.mrf.mxu0 }
  0xcd   :  { %v201_v41 = vadd.f32 %v572_v34, %v72_v32  ;;  %v216_v57 = vmax.f32 %v186_v50, 0.0 }
  0xce   :  { %v195_v36 = vpop.f32.mrf.mxu0 }
  0xcf   :  { %v196_v45 = vadd.f32 %v195_v36, %v67_v37  ;;  %v219_v49 = vmax.f32 %v201_v41, 0.0  ;;  %v416_v36 = vld [vmem:[%s825_s5] sm:$0xf]  ;;  %v421_v37 = vpop.permute.xlu0 %420 }
  0xd0   :  { %v575_v38 = vpop.f32.mrf.mxu0 }
  0xd1   :  { %v211_v39 = vadd.f32 %v575_v38, %v82_v30  ;;  %v218_v51 = vmax.f32 %v196_v45, 0.0 }
  0xd2   :  { %v205_v40 = vpop.f32.mrf.mxu0 }
  0xd3   :  { %v221_v42 = vmax.f32 %v211_v39, 0.0  ;;  %v206_v43 = vadd.f32 %v205_v40, %v77_v35 }
  0xd5   :  { %v220_v46 = vmax.f32 %v206_v43, 0.0  ;;  %576 = vmatprep.subr.mxu1 %v221_v42 }
  0xd6   :  { %577 = vmatpush3.msra.mxu1 %v221_v42 }
  0xd7   :  { %578 = vmatprep.subr.mxu1 %v220_v46 }
  0xd8   :  { %579 = vmatpush3.msra.mxu1 %v220_v46 }
  0xd9   :  { %580 = vmatprep.subr.mxu1 %v219_v49 }
  0xda   :  { %581 = vmatpush3.msra.mxu1 %v219_v49 }
  0xdb   :  { %582 = vmatprep.subr.mxu1 %v218_v51 }
  0xdc   :  { %583 = vmatpush3.msra.mxu1 %v218_v51 }
  0xdd   :  { %584 = vmatprep.subr.mxu1 %v217_v54 }
  0xde   :  { %585 = vmatpush3.msra.mxu1 %v217_v54 }
  0xdf   :  { %586 = vmatprep.subr.mxu1 %v216_v57 }
  0xe0   :  { %587 = vmatpush3.msra.mxu1 %v216_v57 }
  0xe1   :  { %588 = vmatprep.subr.mxu1 %v215_v58 }
  0xe2   :  { %589 = vmatpush3.msra.mxu1 %v215_v58 }
  0xe3   :  { %590 = vmatprep.subr.mxu1 %v214_v59 }
  0xe4   :  { %591 = vmatpush3.msra.mxu1 %v214_v59 }
  0xe5   :  { %593 = vmatmul.mubr.msk.f32.vlgmr.msra.gmra.mxu1 %vm278_vm1, %v223_v60 }
  0xe6   :  { %595 = vmatprep.mubr.msk.f32.mxu1 %vm278_vm1, %v224_v61 }
  0xe9   :  { %596 = vmatmul.mubr.msk.f32.gmra.mxu1 %vm278_vm1, %v225_v62 }
  0xea   :  { %598 = vmatprep.mubr.msk.f32.mxu1 %vm278_vm1, %v226_v63 }
  0xed   :  { %599 = vmatmul.mubr.msk.f32.gmra.mxu1 %vm278_vm1, %v227_v0 }
  0xee   :  { %601 = vmatprep.mubr.msk.f32.mxu1 %vm278_vm1, %v228_v1 }
  0xf1   :  { %602 = vmatmul.mubr.msk.f32.gmra.mxu1 %vm278_vm1, %v229_v2 }
 0x1a5   :  { %v594_v4 = vpop.f32.mrf.mxu1 }
 0x1a6   :  { %v375_v29 = vadd.f32 %v594_v4, %v246_v28 }
 0x1a7   :  { %v369_v5 = vpop.f32.mrf.mxu1 }
 0x1a8   :  { %v370_v32 = vadd.f32 %v369_v5, %v241_v31  ;;  %v409_v34 = vmax.f32 %v375_v29, 0.0 }
 0x1a9   :  { %v597_v7 = vpop.f32.mrf.mxu1 }
 0x1aa   :  { %v385_v24 = vadd.f32 %v597_v7, %v256_v20  ;;  %v408_v35 = vmax.f32 %v370_v32, 0.0 }
 0x1ab   :  { %v379_v9 = vpop.f32.mrf.mxu1 }
 0x1ac   :  { %v380_v26 = vadd.f32 %v379_v9, %v251_v23  ;;  %v411_v30 = vmax.f32 %v385_v24, 0.0 }
 0x1ad   :  { %v600_v10 = vpop.f32.mrf.mxu1 }
 0x1ae   :  { %v395_v17 = vadd.f32 %v600_v10, %v266_v11  ;;  %v410_v33 = vmax.f32 %v380_v26, 0.0 }
 0x1af   :  { %v389_v12 = vpop.f32.mrf.mxu1 }
 0x1b0   :  { %v390_v21 = vadd.f32 %v389_v12, %v261_v13  ;;  %v413_v25 = vmax.f32 %v395_v17, 0.0 }
 0x1b1   :  { %v603_v14 = vpop.f32.mrf.mxu1 }
 0x1b2   :  { %v405_v15 = vadd.f32 %v603_v14, %v276_v6  ;;  %v412_v27 = vmax.f32 %v390_v21, 0.0 }
 0x1b3   :  { %v399_v16 = vpop.f32.mrf.mxu1 }
 0x1b4   :  { %v415_v18 = vmax.f32 %v405_v15, 0.0  ;;  %v400_v19 = vadd.f32 %v399_v16, %v271_v8 }
 0x1b6   :  { %v414_v22 = vmax.f32 %v400_v19, 0.0  ;;  %605 = vmatpush3.msra.mxu0 %v415_v18 }
 0x1b7   :  { %606 = vmatprep.subr.mxu0 %v652_v3 }
 0x1b8   :  { %607 = vmatpush3.msra.mxu0 %v414_v22 }
 0x1b9   :  { %608 = vmatprep.subr.mxu0 %v652_v3 }
 0x1ba   :  { %609 = vmatpush3.msra.mxu0 %v413_v25 }
 0x1bb   :  { %610 = vmatprep.subr.mxu0 %v652_v3 }
 0x1bc   :  { %611 = vmatpush3.msra.mxu0 %v412_v27 }
 0x1bd   :  { %612 = vmatprep.subr.mxu0 %v652_v3 }
 0x1be   :  { %613 = vmatpush3.msra.mxu0 %v411_v30 }
 0x1bf   :  { %614 = vmatprep.subr.mxu0 %v652_v3 }
 0x1c0   :  { %615 = vmatpush3.msra.mxu0 %v410_v33 }
 0x1c1   :  { %616 = vmatprep.subr.mxu0 %v652_v3 }
 0x1c2   :  { %617 = vmatpush3.msra.mxu0 %v409_v34 }
 0x1c3   :  { %618 = vmatprep.subr.mxu0 %v652_v3 }
 0x1c4   :  { %619 = vmatpush3.msra.mxu0 %v408_v35 }
 0x1c5   :  { %621 = vmatmul.mubr.msk.f32.vlgmr.msra.gmra.mxu0 %vm278_vm1, %v416_v36 }
 0x285   :  { %v492_v38 = vpop.f32.mrf.mxu0 }
 0x286   :  { %v493_v39 = vadd.f32 %v492_v38, %v421_v37 }
 0x287   :  { %v622_v40 = vpop.f32.mrf.mxu0 }
 0x288   :  { %496 = vst [vmem:[#allocation2] sm:$0xf] %v493_v39 }
 0x289   :  { %640 = shalt.err (!%p637_p4)
}
 0x28a   :  { %506 = dma.vmem_to_hbm [thread:$0]  %s504_s16, 64, %s827_s7, [#allocation3]  }
 0x28b   :  { %649 = dma.done.wait [#allocation3], 64  }
 0x28c   :  { %650 = vsyncadd [#allocation3], 4294967232 }
 0x28d   :  { %510 = vsyncpa [#allocation3], 1 }

</bundles_post_ra>
